<compile_context>
chip_gen: v7x
topology: tpu7x:2x2x1
jax: 0.10.0
libtpu: 0.0.40
codegen_flags: <defaults>
</compile_context>

<pallas_src>
import numpy as np
import jax
import jax.numpy as jnp
from jax import lax
from jax.experimental import pallas as pl
from jax.experimental.pallas import tpu as pltpu

IN_FEATURES = 128     # in_features (lane-aligned)
MAX_ITER = 128        # module default
THRESHOLD = 0.0       # module default
EPS = 1e-6            # _run default
# bias=False (module default) -> no bias term.


def _sign(v):
    # matches torch.sign: sign(0) == 0
    # (left as a double-where on purpose: VPU has large slack at (1, N),
    #  review item 10 -- do not micro-opt.)
    return jnp.where(v > 0, 1.0, jnp.where(v < 0, -1.0, 0.0)).astype(v.dtype)


def hopfield_kernel(x_ref, wt_ref, o_ref):
    WT = wt_ref[...]          # (N, N) bf16, pre-transposed W.T (loop-invariant)
    x0 = x_ref[...]           # (1, N) f32

    def linear(xv):
        # F.linear(x, W) == x @ W.T ; WT is already W.T, so the contraction is
        # LHS dim 1 vs RHS dim 0 -> no in-loop transpose / layout copy.
        return lax.dot_general(xv.astype(jnp.bfloat16), WT,
                               (((1,), (0,)), ((), ())),
                               preferred_element_type=jnp.float32)

    def energy(lin, xv):
        # -0.5 * x @ W @ x == -0.5 * sum((x @ W.T) * x)  (exact for any W);
        # kept as (1, 1) so the f32 math stays on the VPU.
        return -0.5 * jnp.sum(lin * xv, axis=-1, keepdims=True)

    def update(lin):
        pre = lin if THRESHOLD == 0.0 else lin - THRESHOLD   # folded at trace time
        return _sign(pre)

    lin0 = linear(x0)
    e0 = energy(lin0, x0)

    def cond(carry):
        _, _, _, i, converged = carry
        return jnp.logical_and(jnp.logical_not(converged), i < MAX_ITER)

    def body(carry):
        _, lin, e, i, _ = carry

        # ---- iteration i+1 -------------------------------------------------
        x1 = update(lin)
        lin1 = linear(x1)                          # single MXU matvec
        e1 = energy(lin1, x1)
        c1 = jnp.abs(e1 - e)[0, 0] < EPS           # one f32 -> sreg per update

        # ---- iteration i+2 (speculative; dropped if c1 or out of budget) ---
        x2 = update(lin1)
        lin2 = linear(x2)
        e2 = energy(lin2, x2)
        c2 = jnp.abs(e2 - e1)[0, 0] < EPS

        take_second = jnp.logical_and(jnp.logical_not(c1), i + 1 < MAX_ITER)
        x_out = jnp.where(take_second, x2, x1)
        lin_out = jnp.where(take_second, lin2, lin1)
        e_out = jnp.where(take_second, e2, e1)
        i_out = i + jnp.where(take_second, jnp.int32(2), jnp.int32(1))
        converged = jnp.where(take_second, c2, c1)
        return x_out, lin_out, e_out, i_out, converged

    x_final, _, _, _, _ = lax.while_loop(
        cond, body, (x0, lin0, e0, jnp.int32(0), jnp.array(False)))
    o_ref[...] = x_final


def prepare_weights(W):
    """One-time weight prep, hoisted out of the hot path (review item 8):
    transpose so the kernel contracts against dim 0, and cast to bf16
    (halves the HBM->VMEM DMA and the MXU weight streaming per matvec)."""
    return jnp.asarray(np.asarray(W, dtype=np.float32).T, dtype=jnp.bfloat16)


@jax.jit
def hopfield_forward(x, wt_bf16):
    """x: (N,) probe, wt_bf16: (N, N) pre-transposed bf16 weights -> (N,) f32."""
    N = wt_bf16.shape[0]
    assert x.ndim == 1 and x.shape[0] == N
    x_row = x.reshape(1, N).astype(jnp.float32)
    out = pl.pallas_call(
        hopfield_kernel,
        out_shape=jax.ShapeDtypeStruct((1, N), jnp.float32),
        in_specs=[
            pl.BlockSpec(memory_space=pltpu.MemorySpace.VMEM),   # x   (1, N) f32
            pl.BlockSpec(memory_space=pltpu.MemorySpace.VMEM),   # W.T (N, N) bf16
        ],
        out_specs=pl.BlockSpec(memory_space=pltpu.MemorySpace.VMEM),
    )(x_row, wt_bf16)
    return out.reshape(N)


# ---------------------------------------------------------------------------
# Deterministic parameter setup (equivalent of train_weights, done in numpy)
# ---------------------------------------------------------------------------
def build_weights_and_input():
    key = jax.random.PRNGKey(0)
    k_pat, _ = jax.random.split(key)
    patterns = np.array(
        jax.random.bernoulli(k_pat, 0.5, (2, IN_FEATURES))
    ).astype(np.float32) * 2.0 - 1.0                         # two +-1 patterns

    num_data, n = patterns.shape
    rho = patterns.sum() / (num_data * n)
    W = np.zeros((n, n), dtype=np.float32)
    for p in patterns:
        t = p - rho
        W += np.outer(t, t)
    W -= np.diag(np.diag(W))
    W /= num_data

    # probe: first pattern with the first 10 bits flipped
    x = patterns[0].copy()
    x[:10] *= -1.0
    return W.astype(np.float32), x.astype(np.float32)


# ---------------------------------------------------------------------------
# Pure-numpy reference (mirrors HopfieldNet._run; float64 like torch's `float`)
# ---------------------------------------------------------------------------
def hopfield_ref(x, W, threshold=THRESHOLD, max_iter=MAX_ITER, eps=EPS):
    x = np.asarray(x, dtype=np.float64)
    W = np.asarray(W, dtype=np.float64)
    e = -0.5 * x @ W @ x
    for _ in range(max_iter):
        x = np.sign(x @ W.T - threshold)
        new_e = -0.5 * x @ W @ x
        if abs(new_e - e) < eps:
            return x
        e = new_e
    return x


if __name__ == "__main__":
    W_np, x_np = build_weights_and_input()
    wt = prepare_weights(W_np)            # one-time transpose + bf16 cast
    x = jnp.asarray(x_np)

    out = hopfield_forward(x, wt)
    out = jax.block_until_ready(out)

    ref = hopfield_ref(x_np, W_np)        # float64 reference (torch semantics)
    np.testing.assert_allclose(np.asarray(out), ref, atol=1e-5)
    print("KERNEL_OK")
</pallas_src>

<mosaic_0001>
module attributes {stable_mosaic.version = 11 : i64} {
  func.func @hopfield_kernel(%arg0: memref<1x128xf32, #tpu.memory_space<vmem>>, %arg1: memref<128x128xbf16, #tpu.memory_space<vmem>>, %arg2: memref<1x128xf32, #tpu.memory_space<vmem>>) attributes {dimension_semantics = [], scalar_prefetch = 0 : i64, scratch_operands = 0 : i64, tpu.core_type = #tpu.core_type<tc>} {
    %c0 = arith.constant 0 : index
    %c0_0 = arith.constant 0 : index
    %0 = vector.load %arg1[%c0, %c0_0] : memref<128x128xbf16, #tpu.memory_space<vmem>>, vector<128x128xbf16>
    %c0_1 = arith.constant 0 : index
    %c0_2 = arith.constant 0 : index
    %1 = vector.load %arg0[%c0_1, %c0_2] : memref<1x128xf32, #tpu.memory_space<vmem>>, vector<1x128xf32>
    %2 = arith.truncf %1 : vector<1x128xf32> to vector<1x128xbf16>
    %cst = arith.constant dense<0.000000e+00> : vector<1x128xf32>
    %3 = tpu.matmul %2, %0, %cst {dimension_numbers = #tpu.dot_dimension_numbers<[1], [0], [0], [1], [0, 0, 1, 1], [], []>} : vector<1x128xbf16>, vector<128x128xbf16>, vector<1x128xf32> -> vector<1x128xf32>
    %4 = arith.mulf %3, %1 : vector<1x128xf32>
    %cst_3 = arith.constant dense<0.000000e+00> : vector<1xf32>
    %5 = vector.multi_reduction <add>, %4, %cst_3 [1] : vector<1x128xf32> to vector<1xf32>
    %6 = vector.shape_cast %5 : vector<1xf32> to vector<1x1xf32>
    %cst_4 = arith.constant -5.000000e-01 : f32
    %7 = vector.broadcast %cst_4 : f32 to vector<1x1xf32>
    %8 = arith.mulf %7, %6 : vector<1x1xf32>
    %c0_i32 = arith.constant 0 : i32
    %false = arith.constant false
    %9:5 = scf.while (%arg3 = %1, %arg4 = %3, %arg5 = %8, %arg6 = %c0_i32, %arg7 = %false) : (vector<1x128xf32>, vector<1x128xf32>, vector<1x1xf32>, i32, i1) -> (vector<1x128xf32>, vector<1x128xf32>, vector<1x1xf32>, i32, i1) {
      %true = arith.constant true
      %11 = arith.xori %arg7, %true : i1
      %c128_i32 = arith.constant 128 : i32
      %12 = arith.cmpi slt, %arg6, %c128_i32 : i32
      %13 = arith.andi %11, %12 : i1
      scf.condition(%13) %arg3, %arg4, %arg5, %arg6, %arg7 : vector<1x128xf32>, vector<1x128xf32>, vector<1x1xf32>, i32, i1
    } do {
    ^bb0(%arg3: vector<1x128xf32>, %arg4: vector<1x128xf32>, %arg5: vector<1x1xf32>, %arg6: i32, %arg7: i1):
      %cst_7 = arith.constant 0.000000e+00 : f32
      %11 = vector.broadcast %cst_7 : f32 to vector<1x128xf32>
      %12 = arith.cmpf ogt, %arg4, %11 : vector<1x128xf32>
      %cst_8 = arith.constant 0.000000e+00 : f32
      %13 = vector.broadcast %cst_8 : f32 to vector<1x128xf32>
      %14 = arith.cmpf olt, %arg4, %13 : vector<1x128xf32>
      %cst_9 = arith.constant -1.000000e+00 : f32
      %cst_10 = arith.constant 0.000000e+00 : f32
      %15 = vector.broadcast %cst_9 : f32 to vector<1x128xf32>
      %16 = vector.broadcast %cst_10 : f32 to vector<1x128xf32>
      %17 = arith.select %14, %15, %16 : vector<1x128xi1>, vector<1x128xf32>
      %cst_11 = arith.constant 1.000000e+00 : f32
      %18 = vector.broadcast %cst_11 : f32 to vector<1x128xf32>
      %19 = arith.select %12, %18, %17 : vector<1x128xi1>, vector<1x128xf32>
      %20 = arith.truncf %19 : vector<1x128xf32> to vector<1x128xbf16>
      %cst_12 = arith.constant dense<0.000000e+00> : vector<1x128xf32>
      %21 = tpu.matmul %20, %0, %cst_12 {dimension_numbers = #tpu.dot_dimension_numbers<[1], [0], [0], [1], [0, 0, 1, 1], [], []>} : vector<1x128xbf16>, vector<128x128xbf16>, vector<1x128xf32> -> vector<1x128xf32>
      %22 = arith.mulf %21, %19 : vector<1x128xf32>
      %cst_13 = arith.constant dense<0.000000e+00> : vector<1xf32>
      %23 = vector.multi_reduction <add>, %22, %cst_13 [1] : vector<1x128xf32> to vector<1xf32>
      %24 = vector.shape_cast %23 : vector<1xf32> to vector<1x1xf32>
      %cst_14 = arith.constant -5.000000e-01 : f32
      %25 = vector.broadcast %cst_14 : f32 to vector<1x1xf32>
      %26 = arith.mulf %25, %24 : vector<1x1xf32>
      %27 = arith.subf %26, %arg5 : vector<1x1xf32>
      %28 = math.absf %27 : vector<1x1xf32>
      %29 = vector.extract %28[0, 0] : f32 from vector<1x1xf32>
      %cst_15 = arith.constant 9.99999997E-7 : f32
      %30 = arith.cmpf olt, %29, %cst_15 : f32
      %cst_16 = arith.constant 0.000000e+00 : f32
      %31 = vector.broadcast %cst_16 : f32 to vector<1x128xf32>
      %32 = arith.cmpf ogt, %21, %31 : vector<1x128xf32>
      %cst_17 = arith.constant 0.000000e+00 : f32
      %33 = vector.broadcast %cst_17 : f32 to vector<1x128xf32>
      %34 = arith.cmpf olt, %21, %33 : vector<1x128xf32>
      %cst_18 = arith.constant -1.000000e+00 : f32
      %cst_19 = arith.constant 0.000000e+00 : f32
      %35 = vector.broadcast %cst_18 : f32 to vector<1x128xf32>
      %36 = vector.broadcast %cst_19 : f32 to vector<1x128xf32>
      %37 = arith.select %34, %35, %36 : vector<1x128xi1>, vector<1x128xf32>
      %cst_20 = arith.constant 1.000000e+00 : f32
      %38 = vector.broadcast %cst_20 : f32 to vector<1x128xf32>
      %39 = arith.select %32, %38, %37 : vector<1x128xi1>, vector<1x128xf32>
      %40 = arith.truncf %39 : vector<1x128xf32> to vector<1x128xbf16>
      %cst_21 = arith.constant dense<0.000000e+00> : vector<1x128xf32>
      %41 = tpu.matmul %40, %0, %cst_21 {dimension_numbers = #tpu.dot_dimension_numbers<[1], [0], [0], [1], [0, 0, 1, 1], [], []>} : vector<1x128xbf16>, vector<128x128xbf16>, vector<1x128xf32> -> vector<1x128xf32>
      %42 = arith.mulf %41, %39 : vector<1x128xf32>
      %cst_22 = arith.constant dense<0.000000e+00> : vector<1xf32>
      %43 = vector.multi_reduction <add>, %42, %cst_22 [1] : vector<1x128xf32> to vector<1xf32>
      %44 = vector.shape_cast %43 : vector<1xf32> to vector<1x1xf32>
      %cst_23 = arith.constant -5.000000e-01 : f32
      %45 = vector.broadcast %cst_23 : f32 to vector<1x1xf32>
      %46 = arith.mulf %45, %44 : vector<1x1xf32>
      %47 = arith.subf %46, %26 : vector<1x1xf32>
      %48 = math.absf %47 : vector<1x1xf32>
      %49 = vector.extract %48[0, 0] : f32 from vector<1x1xf32>
      %cst_24 = arith.constant 9.99999997E-7 : f32
      %50 = arith.cmpf olt, %49, %cst_24 : f32
      %true = arith.constant true
      %51 = arith.xori %30, %true : i1
      %c1_i32 = arith.constant 1 : i32
      %52 = arith.addi %arg6, %c1_i32 : i32
      %c128_i32 = arith.constant 128 : i32
      %53 = arith.cmpi slt, %52, %c128_i32 : i32
      %54 = arith.andi %51, %53 : i1
      %55 = arith.select %54, %39, %19 : vector<1x128xf32>
      %56 = arith.select %54, %41, %21 : vector<1x128xf32>
      %57 = arith.select %54, %46, %26 : vector<1x1xf32>
      %c2_i32 = arith.constant 2 : i32
      %c1_i32_25 = arith.constant 1 : i32
      %58 = arith.select %54, %c2_i32, %c1_i32_25 : i32
      %59 = arith.addi %arg6, %58 : i32
      %60 = arith.select %54, %50, %30 : i1
      scf.yield %55, %56, %57, %59, %60 : vector<1x128xf32>, vector<1x128xf32>, vector<1x1xf32>, i32, i1
    }
    %c0_5 = arith.constant 0 : index
    %c0_6 = arith.constant 0 : index
    %10 = vector.load %arg2[%c0_5, %c0_6] : memref<1x128xf32, #tpu.memory_space<vmem>>, vector<1x128xf32>
    tpu.vector_store %arg2[%c0_5, %c0_6], %9#0 {strides = array<i32>} : memref<1x128xf32, #tpu.memory_space<vmem>>, vector<1x128xf32>,
    return
  }
}

</mosaic_0001>

<bundles_post_ra>
// kernel: hopfield_forward.1
= control target key start
LH: loop header
LB: loop body
LE: loop exit
PB: predicated region body
PF: predicated region fallthrough
CT: control target
= control target key end

     0   :  { %7 = vsyncpa [#allocation3], 0  ;;  %s648_s0 = inlined_call_operand.vmem [shape: f32[1,128], index: 0, kind: input, shape index: {}]   ;;  %s649_s1 = inlined_call_operand.hbm [shape: bf16[128,128], index: 1, kind: input, shape index: {}]   ;;  %s650_s2 = inlined_call_operand.hbm [shape: f32[1,128], index: 2, kind: output, shape index: {}]  }
   0x1   :  { %8 = vsyncpa [#allocation4], 0  ;;  %s524_s9 = smov [#allocation2]   ;;  %s452_s13 = scalar_lea.hbm %s649_s1, 1024 }
   0x2   :  { %s16_s10 = sshll.u32 %s524_s9, 4  ;;  %p453_p0 = scmp.ne.s32.totalorder %s649_s1, %s452_s13  ;;  %s17_s10 = int_to_ptr.vmem [resolvable:$true] %s16_s10 }
   0x3   :  { %p456_p1 = scmp.lt.u32.totalorder %s452_s13, %s649_s1 }
   0x5   :  { %p458_p2 = pnand %p456_p1, %p453_p0 }
   0x7   :  { %461 = shalt.err (!%p458_p2)
}
   0x8   :  { %s462_s18 = scalar_lea.vmem %s17_s10, 1024  ;;  %p467_p4 = scmp.lt.s32.totalorder %s17_s10, %s17_s10 }
   0x9   :  { %p463_p3 = scmp.ne.s32.totalorder %s17_s10, %s462_s18  ;;  %p468_p5 = scmp.lt.s32.totalorder %s462_s18, %s462_s18 }
   0xb   :  { %p469_p6 = por %p468_p5, %p467_p4 }
   0xd   :  { %p470_p7 = pnand %p469_p6, %p463_p3 }
   0xf   :  { %473 = shalt.err (!%p470_p7)
}
  0x10   :  { %s525_s19 = smov 64   ;;  %s526_s20 = smov 4  }
  0x11   :  { %22 = dma.hbm_to_vmem [thread:$0]  %s649_s1, 1024, %s17_s10, [#allocation3], %s525_s19, %s525_s19, %s526_s20  }
  0x12   :  { %508 = dma.done.wait [#allocation3], 1024  }
  0x13   :  { %509 = vsyncadd [#allocation3], 4294966272  ;;  %v527_v0 = vmov 0.0   ;;  %vm528_vm0 = vmmov 0   ;;  %v559_v1 = vld [vmem:[#allocation2] sm:$0xff]   ;;  %v562_v2 = vld [vmem:[#allocation2 + $0x8] sm:$0xff]  }
  0x14   :  { %348 = vmatprep.subr.bf16.mxu0 %v527_v0  ;;  %364 = vmatprep.mubr.msk.bf16.mxu0 %vm528_vm0, %v527_v0  ;;  %v565_v3 = vld [vmem:[#allocation2 + $0x10] sm:$0xff]   ;;  %v568_v4 = vld [vmem:[#allocation2 + $0x18] sm:$0xff]   ;;  %v571_v5 = vld [vmem:[#allocation2 + $0x20] sm:$0xff]   ;;  %vm134_vm1 = vcmask 1040384   ;;  %s587_s24 = smov 0  }
  0x15   :  { %349 = vmatpush3.bf16.msra.mxu0 %v559_v1  ;;  %v574_v6 = vld [vmem:[#allocation2 + $0x28] sm:$0xff]   ;;  %v577_v7 = vld [vmem:[#allocation2 + $0x30] sm:$0xff]   ;;  %v580_v8 = vld [vmem:[#allocation2 + $0x38] sm:$0xff]  }
  0x16   :  { %350 = vmatprep.subr.bf16.mxu0 %v527_v0  ;;  %v43_v9 = vld [vmem:[%s648_s0] sm:$0x1] }
  0x17   :  { %v44_v10 = vpack.c.bf16 %v43_v9, %v43_v9 }
  0x19   :  { %351 = vmatpush3.bf16.msra.mxu0 %v562_v2 }
  0x1a   :  { %352 = vmatprep.subr.bf16.mxu0 %v527_v0 }
  0x1d   :  { %353 = vmatpush3.bf16.msra.mxu0 %v565_v3 }
  0x1e   :  { %354 = vmatprep.subr.bf16.mxu0 %v527_v0 }
  0x21   :  { %355 = vmatpush3.bf16.msra.mxu0 %v568_v4 }
  0x22   :  { %356 = vmatprep.subr.bf16.mxu0 %v527_v0 }
  0x25   :  { %357 = vmatpush3.bf16.msra.mxu0 %v571_v5 }
  0x26   :  { %358 = vmatprep.subr.bf16.mxu0 %v527_v0 }
  0x29   :  { %359 = vmatpush3.bf16.msra.mxu0 %v574_v6 }
  0x2a   :  { %360 = vmatprep.subr.bf16.mxu0 %v527_v0 }
  0x2d   :  { %361 = vmatpush3.bf16.msra.mxu0 %v577_v7 }
  0x2e   :  { %362 = vmatprep.subr.bf16.mxu0 %v527_v0 }
  0x31   :  { %363 = vmatpush3.bf16.msra.mxu0 %v580_v8 }
  0x34   :  { %365 = vmatmul.mubr.bf16.vlgmr.msra.gmra.mrb[0].mxu0 %v44_v10 }
 0x107   :  { %v127_v11 = vpop.f32.mrb[0].mxu0  }
 0x108   :  { %v133_v12 = vmul.f32 %v127_v11, %v43_v9  ;;  %v366_v13 = vpop.f32.mrb[1].mxu0 }
 0x109   :  { %v130_v14 = vpop.f32.mrb[2].mxu0 }
 0x10a   :  { %v367_v15 = vpop.f32.mrb[3].mxu0  ;;  %v135_v16 = vsel %vm134_vm1, %v133_v12, 0.0 }
 0x10b   :  { %136 = vadd.xlane.f32.xlu0 %v135_v16 }
 0x198   :  { %v137_v17 = vpop.xlane.xlu0 %136 }
 0x199   :  { %v138_v18 = vmul.f32 -0.5, %v137_v17  }
 0x19a LB: > { %v529_v19 = vmov 0.0   ;;  %vm530_vm2 = vmmov 0   ;;  %vm152_vm3 = vcmp.lt.f32.partialorder %v522_v11, 0.0  ;;  %vm151_vm4 = vcmp.gt.f32.partialorder %v522_v11, 0.0  ;;  %s260_s0 = sadd.s32 1, %s514_s24  ;;  %v522_v11 = vphi %v127_v11, %v268_v11   ;;  %v518_v18 = vphi %v138_v18, %v269_v18   ;;  %s514_s24 = sphi %s587_s24, %s271_s24  }
 0x19b   : > { %368 = vmatprep.subr.bf16.mxu0 %v529_v19  ;;  %384 = vmatprep.mubr.msk.bf16.mxu0 %vm530_vm2, %v529_v19  ;;  %v153_v20 = vsel %vm152_vm3, -1.0, %v529_v19  ;;  %p261_p9 = scmp.lt.s32.totalorder %s260_s0, 128 }
 0x19c   : > { %369 = vmatpush3.bf16.msra.mxu0 %v559_v1  ;;  %388 = vmatprep.subr.bf16.mxu1 %v529_v19  ;;  %v154_v21 = vsel %vm151_vm4, 1.0, %v153_v20 }
 0x19d   : > { %370 = vmatprep.subr.bf16.mxu0 %v529_v19  ;;  %389 = vmatpush3.bf16.msra.mxu1 %v559_v1  ;;  %v155_v22 = vpack.c.bf16 %v154_v21, %v154_v21 }
 0x19e   : > { %390 = vmatprep.subr.bf16.mxu1 %v529_v19  ;;  %404 = vmatprep.mubr.msk.bf16.mxu1 %vm530_vm2, %v529_v19 }
 0x1a0   : > { %371 = vmatpush3.bf16.msra.mxu0 %v562_v2 }
 0x1a1   : > { %372 = vmatprep.subr.bf16.mxu0 %v529_v19  ;;  %391 = vmatpush3.bf16.msra.mxu1 %v562_v2 }
 0x1a2   : > { %392 = vmatprep.subr.bf16.mxu1 %v529_v19 }
 0x1a4   : > { %373 = vmatpush3.bf16.msra.mxu0 %v565_v3 }
 0x1a5   : > { %374 = vmatprep.subr.bf16.mxu0 %v529_v19  ;;  %393 = vmatpush3.bf16.msra.mxu1 %v565_v3 }
 0x1a6   : > { %394 = vmatprep.subr.bf16.mxu1 %v529_v19 }
 0x1a8   : > { %375 = vmatpush3.bf16.msra.mxu0 %v568_v4 }
 0x1a9   : > { %376 = vmatprep.subr.bf16.mxu0 %v529_v19  ;;  %395 = vmatpush3.bf16.msra.mxu1 %v568_v4 }
 0x1aa   : > { %396 = vmatprep.subr.bf16.mxu1 %v529_v19 }
 0x1ac   : > { %377 = vmatpush3.bf16.msra.mxu0 %v571_v5 }
 0x1ad   : > { %378 = vmatprep.subr.bf16.mxu0 %v529_v19  ;;  %397 = vmatpush3.bf16.msra.mxu1 %v571_v5 }
 0x1ae   : > { %398 = vmatprep.subr.bf16.mxu1 %v529_v19 }
 0x1b0   : > { %379 = vmatpush3.bf16.msra.mxu0 %v574_v6 }
 0x1b1   : > { %380 = vmatprep.subr.bf16.mxu0 %v529_v19  ;;  %399 = vmatpush3.bf16.msra.mxu1 %v574_v6 }
 0x1b2   : > { %400 = vmatprep.subr.bf16.mxu1 %v529_v19 }
 0x1b4   : > { %381 = vmatpush3.bf16.msra.mxu0 %v577_v7 }
 0x1b5   : > { %382 = vmatprep.subr.bf16.mxu0 %v529_v19  ;;  %401 = vmatpush3.bf16.msra.mxu1 %v577_v7 }
 0x1b6   : > { %402 = vmatprep.subr.bf16.mxu1 %v529_v19 }
 0x1b8   : > { %383 = vmatpush3.bf16.msra.mxu0 %v580_v8 }
 0x1b9   : > { %403 = vmatpush3.bf16.msra.mxu1 %v580_v8 }
 0x1bb   : > { %385 = vmatmul.mubr.bf16.vlgmr.msra.gmra.mrb[0].mxu0 %v155_v22 }
 0x28e   : > { %v190_v23 = vpop.f32.mrb[0].mxu0 }
 0x28f   : > { %vm205_vm5 = vcmp.gt.f32.partialorder %v190_v23, 0.0  ;;  %vm206_vm6 = vcmp.lt.f32.partialorder %v190_v23, 0.0  ;;  %v386_v24 = vpop.f32.mrb[1].mxu0  ;;  %v196_v25 = vmul.f32 %v190_v23, %v154_v21 }
 0x290   : > { %v207_v26 = vsel %vm206_vm6, -1.0, %v529_v19  ;;  %v193_v27 = vpop.f32.mrb[2].mxu0 }
 0x291   : > { %v387_v28 = vpop.f32.mrb[3].mxu0  ;;  %v197_v29 = vsel %vm134_vm1, %v196_v25, 0.0  ;;  %v208_v30 = vsel %vm205_vm5, 1.0, %v207_v26 }
 0x292   : > { %198 = vadd.xlane.f32.xlu0 %v197_v29  ;;  %v209_v31 = vpack.c.bf16 %v208_v30, %v208_v30 }
 0x294   : > { %405 = vmatmul.mubr.bf16.vlgmr.msra.gmra.mrb[0].mxu1 %v209_v31 }
 0x31f   : > { %v199_v32 = vpop.xlane.xlu0 %198 }
 0x320   : > { %v200_v33 = vmul.f32 -0.5, %v199_v32 }
 0x322   : > { %v201_v34 = vsub.f32 %v200_v33, %v518_v18 }
 0x324   : > { %v202_v35 = vand.u32 2147483647, %v201_v34 }
 0x326   : > { %408 = vpush %v202_v35 }
 0x357   : > { %s409_s25 = spop %408 }
 0x358   : > { %p204_p8 = scmp.lt.f32.partialorder %s409_s25, 1e-06 }
 0x35a   : > { %p259_p10 = pneg %p204_p8 }
 0x35b   : > { %s273_s30 = scalar_select %p204_p8, 1, 0 }
 0x35c   : > { %p617_p11 = pnand %p261_p9, %p259_p10 }
 0x35e   : > { %s318_s27 = scalar_select %p617_p11, 1, 2 }
 0x35f   : > { %s317_s28 = scalar_select %p617_p11, 0, 1 }
 0x360   : > { %s271_s24 = sadd.s32 %s514_s24, %s318_s27  }
 0x361   : > { %v265_v36 = vstv %s317_s28  ;;  %p146_p0 = scmp.lt.s32.totalorder %s271_s24, 128 }
 0x362   : > { %vm266_vm7 = vcmp.eq.s32.totalorder %v265_v36, 1 }
 0x363   : > { %v267_v37 = vsel %vm266_vm7, %v208_v30, %v154_v21 }
 0x367   : > { %v244_v38 = vpop.f32.mrb[0].mxu1 }
 0x368   : > { %v268_v11 = vsel %vm266_vm7, %v244_v38, %v190_v23   ;;  %v406_v39 = vpop.f32.mrb[1].mxu1  ;;  %v250_v40 = vmul.f32 %v244_v38, %v208_v30 }
 0x369   : > { %v247_v41 = vpop.f32.mrb[2].mxu1 }
 0x36a   : > { %v407_v42 = vpop.f32.mrb[3].mxu1  ;;  %v251_v43 = vsel %vm134_vm1, %v250_v40, 0.0 }
 0x36b   : > { %252 = vadd.xlane.f32.xlu0 %v251_v43 }
 0x3f8   : > { %v253_v44 = vpop.xlane.xlu0 %252 }
 0x3f9   : > { %v254_v45 = vmul.f32 -0.5, %v253_v44 }
 0x3fb   : > { %v255_v46 = vsub.f32 %v254_v45, %v200_v33  ;;  %v269_v18 = vsel %vm266_vm7, %v254_v45, %v200_v33  }
 0x3fd   : > { %v256_v47 = vand.u32 2147483647, %v255_v46 }
 0x3ff   : > { %410 = vpush %v256_v47 }
 0x430   : > { %s411_s29 = spop %410 }
 0x431   : > { %p258_p12 = scmp.lt.f32.partialorder %s411_s29, 1e-06 }
 0x433   : > { %s272_s3 = scalar_select %p258_p12, 1, 0 }
 0x435   : > { %s653_s30 = smov (!%p617_p11, %s273_s30), %s272_s3 }
 0x436   : > { %p320_p13 = scmp.ne.s32.totalorder %s653_s30, 1 }
 0x438   : > { %p147_p1 = pnand %p320_p13, %p146_p0 }
 0x439   :  { %276 = vst [vmem:[#allocation5] sm:$0x1] (%p147_p1), %v267_v37  ;;  %s531_s4 = smov (%p147_p1), [#allocation5]  }
 0x43a   :  { %150 = sbr.rel (!%p147_p1) target bundleno = 410 (0x19a), region = 39  ;;  %s283_s5 = sshll.u32 (%p147_p1), %s531_s4, 4  ;;  %s284_s5 = int_to_ptr.vmem [resolvable:$true] %s283_s5 }
 0x43b   :  { %s474_s6 = scalar_lea.vmem (%p147_p1), %s284_s5, 16  ;;  %s478_s7 = scalar_lea.vmem (%p147_p1), %s284_s5, 32 }
 0x43c   :  { %p475_p2 = scmp.ne.s32.totalorder (%p147_p1), %s284_s5, %s474_s6  ;;  %p479_p3 = scmp.lt.s32.totalorder (%p147_p1), %s284_s5, %s284_s5 }
 0x43d   :  { %p480_p4 = scmp.lt.s32.totalorder (%p147_p1), %s478_s7, %s474_s6 }
 0x43f   :  { %p481_p5 = por (%p147_p1), %p480_p4, %p479_p3 }
 0x441   :  { %p482_p6 = pnand %p481_p5, %p475_p2 }
 0x443   :  { %485 = shalt.err (!%p482_p6)
}
 0x444   :  { %s486_s10 = scalar_lea.hbm %s650_s2, 16 }
 0x445   :  { %p487_p7 = scmp.ne.s32.totalorder %s650_s2, %s486_s10  ;;  %p490_p8 = scmp.lt.u32.totalorder %s486_s10, %s650_s2 }
 0x447   :  { %p492_p9 = pnand %p490_p8, %p487_p7 }
 0x449   :  { %495 = shalt.err (!%p492_p9)
}
 0x44a   :  { %286 = dma.vmem_to_hbm [thread:$0]  %s284_s5, 16, %s650_s2, [#allocation4]  }
 0x44b   :  { %510 = dma.done.wait [#allocation4], 16  }
 0x44c   :  { %511 = vsyncadd [#allocation4], 4294967280 }
 0x44d   :  { %290 = vsyncpa [#allocation3], 1 }
 0x44e   :  { %291 = vsyncpa [#allocation4], 1 }

</bundles_post_ra>
